<compile_context>
chip_gen: v6e
topology: v6e:2x2x1
jax: 0.10.0
libtpu: 0.0.40
codegen_flags: <defaults>
</compile_context>

<pallas_src>
import math

import jax
import jax.numpy as jnp
from jax import lax
from jax.experimental import pallas as pl
from jax.experimental.pallas import tpu as pltpu


# ---------------------------------------------------------------------------
# helpers
# ---------------------------------------------------------------------------
def _vmem_capacity_bytes() -> int:
    """Physical VMEM of the current TPU generation (v5e/v6e 128 MiB, v7x 64 MiB).

    Queried at trace time when possible; falls back to the smallest (v7x) value so
    the chosen tiling is safe on every generation.
    """
    try:
        info = pltpu.get_tpu_info()
        for name in ("vmem_capacity_bytes", "vmem_size_bytes", "vmem_bytes"):
            cap = getattr(info, name, None)
            if cap:
                return int(cap)
    except Exception:
        pass
    return 64 << 20


def _predict_vmem_bytes(b: int, nc: int, nt: int, dx: int) -> int:
    """Rough f32 VMEM footprint of one predict-kernel grid step: double-buffered
    inputs/outputs (BlockSpec pipelining) plus the big in-kernel intermediates
    (ktc, ktt, v, vv)."""
    ins = b * (nt * dx + dx * nc + dx * nt + nc + nc * nc)
    outs = b * (nt + nt * nt)
    interm = b * (2 * nt * nc + 3 * nt * nt)
    return 4 * (2 * (ins + outs) + interm)


def _pick_block_batch(m: int, nc: int, nt: int, dx: int, vmem_budget: int,
                      cap: int = 8) -> int:
    """Largest divisor of m (<= cap) such that
       (a) G = m/B >= 2, so the "parallel" batch axis can shard across v7x's two
           TensorCores and BlockSpec double-buffering actually overlaps, and
       (b) the per-step VMEM footprint fits the per-generation budget."""
    best = 1
    for b in range(1, min(m, cap) + 1):
        if m % b:
            continue
        if m >= 2 and m // b < 2:
            continue
        if _predict_vmem_bytes(b, nc, nt, dx) > vmem_budget:
            continue
        best = b
    return best


def _sqdist_vpu(a, bt):
    """Batched pairwise squared euclidean distances, VPU only.

    a:  (B, n, dx) row-major points
    bt: (B, dx, k) column points (same points, transposed once in the wrapper)
    returns (B, n, k) float32

    dx is tiny (e.g. 2), so the contraction is unrolled into dx broadcast-subtract
    + multiply-add passes instead of a K=dx matmul on the MXU (which would pad the
    contraction to the full systolic width and force operand relayouts).  The
    (a-b)^2 form needs no norms at all, is exactly >= 0 (no max clamp), and is
    exactly symmetric for a == b.
    """
    dx = a.shape[-1]
    d0 = a[:, :, 0:1] - bt[:, 0:1, :]              # (B,n,1) - (B,1,k) -> (B,n,k)
    acc = d0 * d0
    for d in range(1, dx):
        dd = a[:, :, d:d + 1] - bt[:, d:d + 1, :]
        acc = acc + dd * dd
    return acc


def _diag_mask(n):
    r = lax.broadcasted_iota(jnp.int32, (1, n, n), 1)
    c = lax.broadcasted_iota(jnp.int32, (1, n, n), 2)
    return r == c


# ---------------------------------------------------------------------------
# forward wrapper (two pallas_calls around a plain-JAX Cholesky)
# ---------------------------------------------------------------------------
def gp_stream_forward(xc, yc, xt, *, lengthscale, outputscale, noise, mean_const,
                      block_batch=None, matmul_in_bf16=False):
    """Exact-GP predictive distribution, likelihood noise included (matching
    `likelihood(gp(xt))` in the PyTorch module).

    Returns (mean [m, nt], cov [m, nt, nt])."""
    m, nc, dx = xc.shape
    _, nt, _ = xt.shape
    f32 = jnp.float32

    xc = xc.astype(f32)
    yc = yc.astype(f32)
    xt = xt.astype(f32)
    xct = jnp.swapaxes(xc, 1, 2)              # (m, dx, nc): lane-major column pts
    xtt = jnp.swapaxes(xt, 1, 2)              # (m, dx, nt)

    # Fixed hyper-parameters baked as python-float constants (deterministic
    # gpytorch init values); the -0.5/ls^2 factor folds the lengthscale divide.
    gamma = -0.5 / float(lengthscale) ** 2
    osc = float(outputscale)
    nse = float(noise)
    cmean = float(mean_const)
    mm_dtype = jnp.bfloat16 if matmul_in_bf16 else jnp.float32

    # Per-generation tiling: B GPs per grid step, G = m/B grid steps.
    capacity = _vmem_capacity_bytes()
    vmem_budget = int(0.6 * capacity)          # headroom for compiler scratch
    B = block_batch if block_batch is not None else _pick_block_batch(
        m, nc, nt, dx, vmem_budget)
    assert m % B == 0, "block batch size must divide the GP batch dim"
    G = m // B
    vmem_limit = int(min(0.85 * capacity,
                         max(32 << 20, 2 * _predict_vmem_bytes(B, nc, nt, dx))))
    cparams = pltpu.CompilerParams(dimension_semantics=("parallel",),
                                   vmem_limit_bytes=vmem_limit)

    # ---- stage 1: training Gram matrix Kcc + noise*I (Pallas) -----------------
    def kcc_kernel(xc_ref, xct_ref, kcc_ref):
        k = osc * jnp.exp(gamma * _sqdist_vpu(xc_ref[...], xct_ref[...]))
        kcc_ref[...] = jnp.where(_diag_mask(nc), k + nse, k)

    kcc_cost = pl.CostEstimate(
        flops=int(m * nc * nc * (3 * dx + 2)),
        transcendentals=int(m * nc * nc),
        bytes_accessed=int(4 * m * (2 * nc * dx + nc * nc)),
    )
    kcc = pl.pallas_call(
        kcc_kernel,
        grid=(G,),
        in_specs=[
            pl.BlockSpec((B, nc, dx), lambda i: (i, 0, 0)),
            pl.BlockSpec((B, dx, nc), lambda i: (i, 0, 0)),
        ],
        out_specs=pl.BlockSpec((B, nc, nc), lambda i: (i, 0, 0)),
        out_shape=jax.ShapeDtypeStruct((m, nc, nc), f32),
        compiler_params=cparams,
        cost_estimate=kcc_cost,
    )(xc, xct)

    # ---- stage 2: batched Cholesky + triangular solves (plain JAX) ------------
    # TODO(synk): no clean Pallas TPU primitive for cholesky / triangular_solve;
    #             these tiny nc x nc batched systems stay in XLA.
    L = jnp.linalg.cholesky(kcc)                                   # (m, nc, nc)
    resid = yc[..., 0] - cmean                                     # (m, nc)
    z = lax.linalg.triangular_solve(L, resid[..., None],
                                    left_side=True, lower=True)
    alpha = lax.linalg.triangular_solve(L, z, left_side=True, lower=True,
                                        transpose_a=True)          # Kcc^-1 (y-c)
    alpha = jnp.swapaxes(alpha, 1, 2)                              # (m, 1, nc)
    eye = jnp.broadcast_to(jnp.eye(nc, dtype=f32), (m, nc, nc))
    linv = lax.linalg.triangular_solve(L, eye,
                                       left_side=True, lower=True)  # L^-1

    # ---- stage 3: fused Ktc/Ktt construction + posterior (Pallas) -------------
    #   mean = c + Ktc alpha
    #   cov  = Ktt - (Ktc L^-T)(Ktc L^-T)^T + noise * I   (likelihood noise incl.)
    def predict_kernel(xt_ref, xct_ref, xtt_ref, alpha_ref, linv_ref,
                       mean_ref, cov_ref):
        xt_b = xt_ref[...]                                             # (B, nt, dx)
        ktc = osc * jnp.exp(gamma * _sqdist_vpu(xt_b, xct_ref[...]))   # (B, nt, nc)
        ktt = osc * jnp.exp(gamma * _sqdist_vpu(xt_b, xtt_ref[...]))   # (B, nt, nt)

        # predictive mean: VPU broadcast-mul + lane reduce, stored (B, nt)
        mean_ref[0] = cmean + jnp.sum(ktc * alpha_ref[...], axis=-1)

        # predictive covariance; optional bf16 operands / f32 accumulation on the
        # two MXU contractions (the v6e/v7x throughput lever once nc,nt >= 256).
        v = jnp.einsum("bnc,bkc->bnk",
                       ktc.astype(mm_dtype), linv_ref[...].astype(mm_dtype),
                       preferred_element_type=jnp.float32)             # Ktc L^-T
        vv = jnp.einsum("bnk,bmk->bnm",
                        v.astype(mm_dtype), v.astype(mm_dtype),
                        preferred_element_type=jnp.float32)
        cov = ktt - vv
        cov_ref[...] = jnp.where(_diag_mask(nt), cov + nse, cov)

    predict_cost = pl.CostEstimate(
        flops=int(2 * m * nt * nc * (nc + nt) + 3 * m * dx * nt * (nc + nt)),
        transcendentals=int(m * nt * (nc + nt)),
        bytes_accessed=int(4 * m * (nt * dx + dx * nc + dx * nt
                                    + nc + nc * nc + nt + nt * nt)),
    )

    mean_g, cov = pl.pallas_call(
        predict_kernel,
        grid=(G,),
        in_specs=[
            pl.BlockSpec((B, nt, dx), lambda i: (i, 0, 0)),
            pl.BlockSpec((B, dx, nc), lambda i: (i, 0, 0)),
            pl.BlockSpec((B, dx, nt), lambda i: (i, 0, 0)),
            pl.BlockSpec((B, 1, nc), lambda i: (i, 0, 0)),
            pl.BlockSpec((B, nc, nc), lambda i: (i, 0, 0)),
        ],
        out_specs=[
            pl.BlockSpec((1, B, nt), lambda i: (i, 0, 0)),
            pl.BlockSpec((B, nt, nt), lambda i: (i, 0, 0)),
        ],
        out_shape=[
            jax.ShapeDtypeStruct((G, B, nt), f32),
            jax.ShapeDtypeStruct((m, nt, nt), f32),
        ],
        compiler_params=cparams,
        cost_estimate=predict_cost,
    )(xt, xct, xtt, alpha, linv)

    return mean_g.reshape(m, nt), cov


# ---------------------------------------------------------------------------
# plain-JAX reference (same math, no Pallas) for a correctness check
# ---------------------------------------------------------------------------
def _reference_forward(xc, yc, xt, *, lengthscale, outputscale, noise, mean_const):
    g = -0.5 / float(lengthscale) ** 2

    def sq(a, b):
        a2 = jnp.sum(a * a, axis=-1)[..., :, None]
        b2 = jnp.sum(b * b, axis=-1)[..., None, :]
        ab = jnp.einsum("bnd,bkd->bnk", a, b)
        return jnp.maximum(a2 + b2 - 2.0 * ab, 0.0)

    nc = xc.shape[1]
    nt = xt.shape[1]
    kcc = outputscale * jnp.exp(g * sq(xc, xc)) + noise * jnp.eye(nc)
    ktc = outputscale * jnp.exp(g * sq(xt, xc))
    ktt = outputscale * jnp.exp(g * sq(xt, xt))
    kinv = jnp.linalg.inv(kcc)
    resid = yc[..., 0] - mean_const
    mean = mean_const + jnp.einsum("bnc,bc->bn", ktc,
                                   jnp.einsum("bcd,bd->bc", kinv, resid))
    a = jnp.einsum("bnc,bck->bnk", ktc, kinv)
    cov = ktt - jnp.einsum("bnk,bmk->bnm", a, ktc) + noise * jnp.eye(nt)
    return mean, cov


# ---------------------------------------------------------------------------
# main
# ---------------------------------------------------------------------------
if __name__ == "__main__":
    key = jax.random.PRNGKey(0)
    m, nc, nt, dx = 2, 16, 8, 2

    k1, k2, k3 = jax.random.split(key, 3)
    xc = jax.random.uniform(k1, (m, nc, dx), jnp.float32, minval=-2.0, maxval=2.0)
    yc = jnp.sin(jnp.sum(xc, axis=-1, keepdims=True)) \
        + 0.05 * jax.random.normal(k2, (m, nc, 1), jnp.float32)
    xt = jax.random.uniform(k3, (m, nt, dx), jnp.float32, minval=-2.0, maxval=2.0)

    # Deterministic (untrained) gpytorch hyper-parameter initial values.
    lengthscale = 0.25 + 0.75 * 0.5        # Interval(0.25, 1.0) at raw_lengthscale = 0
    outputscale = math.log(2.0)            # softplus(0) for ScaleKernel raw_outputscale
    noise = 0.01                           # likelihood.noise = 0.01 in the module
    mean_const = 0.0                       # ConstantMean default

    mean, cov = gp_stream_forward(
        xc, yc, xt,
        lengthscale=lengthscale,
        outputscale=outputscale,
        noise=noise,
        mean_const=mean_const,
    )
    jax.block_until_ready((mean, cov))

    assert mean.shape == (m, nt)
    assert cov.shape == (m, nt, nt)

    mean_chk, cov_chk = _reference_forward(
        xc, yc, xt,
        lengthscale=lengthscale, outputscale=outputscale,
        noise=noise, mean_const=mean_const,
    )
    assert bool(jnp.all(jnp.isfinite(mean))) and bool(jnp.all(jnp.isfinite(cov)))
    assert bool(jnp.allclose(mean, mean_chk, atol=1e-3, rtol=1e-3))
    assert bool(jnp.allclose(cov, cov_chk, atol=1e-3, rtol=1e-3))
    # covariance is symmetric by construction ((a-b)^2 distances + V V^T form)
    assert bool(jnp.allclose(cov, jnp.swapaxes(cov, 1, 2), atol=1e-6))

    print("KERNEL_OK")
</pallas_src>

<mosaic_0001>
module attributes {stable_mosaic.version = 11 : i64} {
  func.func @kcc_kernel(%arg0: i32, %arg1: memref<1x16x2xf32, #tpu.memory_space<vmem>>, %arg2: memref<1x2x16xf32, #tpu.memory_space<vmem>>, %arg3: memref<1x16x16xf32, #tpu.memory_space<vmem>>) attributes {dimension_semantics = [#tpu.dimension_semantics<parallel>], iteration_bounds = array<i64: 2>, scalar_prefetch = 0 : i64, scratch_operands = 0 : i64, tpu.core_type = #tpu.core_type<tc>, window_params = [{transform_indices = @transform_0, window_bounds = array<i64: 1, 16, 2>}, {transform_indices = @transform_1, window_bounds = array<i64: 1, 2, 16>}, {transform_indices = @transform_2, window_bounds = array<i64: 1, 16, 16>}]} {
    %c0 = arith.constant 0 : index
    %c0_0 = arith.constant 0 : index
    %c0_1 = arith.constant 0 : index
    %0 = vector.load %arg1[%c0, %c0_0, %c0_1] : memref<1x16x2xf32, #tpu.memory_space<vmem>>, vector<1x16x2xf32>
    %c0_2 = arith.constant 0 : index
    %c0_3 = arith.constant 0 : index
    %c0_4 = arith.constant 0 : index
    %1 = vector.load %arg2[%c0_2, %c0_3, %c0_4] : memref<1x2x16xf32, #tpu.memory_space<vmem>>, vector<1x2x16xf32>
    %2 = vector.extract_strided_slice %0 {offsets = [0, 0, 0], sizes = [1, 16, 1], strides = [1, 1, 1]} : vector<1x16x2xf32> to vector<1x16x1xf32>
    %3 = vector.extract_strided_slice %1 {offsets = [0, 0, 0], sizes = [1, 1, 16], strides = [1, 1, 1]} : vector<1x2x16xf32> to vector<1x1x16xf32>
    %4 = vector.broadcast %2 : vector<1x16x1xf32> to vector<1x16x16xf32>
    %5 = vector.broadcast %3 : vector<1x1x16xf32> to vector<1x16x16xf32>
    %6 = arith.subf %4, %5 : vector<1x16x16xf32>
    %7 = arith.mulf %6, %6 : vector<1x16x16xf32>
    %8 = vector.extract_strided_slice %0 {offsets = [0, 0, 1], sizes = [1, 16, 1], strides = [1, 1, 1]} : vector<1x16x2xf32> to vector<1x16x1xf32>
    %9 = vector.extract_strided_slice %1 {offsets = [0, 1, 0], sizes = [1, 1, 16], strides = [1, 1, 1]} : vector<1x2x16xf32> to vector<1x1x16xf32>
    %10 = vector.broadcast %8 : vector<1x16x1xf32> to vector<1x16x16xf32>
    %11 = vector.broadcast %9 : vector<1x1x16xf32> to vector<1x16x16xf32>
    %12 = arith.subf %10, %11 : vector<1x16x16xf32>
    %13 = arith.mulf %12, %12 : vector<1x16x16xf32>
    %14 = arith.addf %7, %13 : vector<1x16x16xf32>
    %cst = arith.constant -1.280000e+00 : f32
    %15 = vector.broadcast %cst : f32 to vector<1x16x16xf32>
    %16 = arith.mulf %15, %14 : vector<1x16x16xf32>
    %17 = math.exp %16 : vector<1x16x16xf32>
    %cst_5 = arith.constant 0.693147182 : f32
    %18 = vector.broadcast %cst_5 : f32 to vector<1x16x16xf32>
    %19 = arith.mulf %18, %17 : vector<1x16x16xf32>
    %20 = tpu.iota {dimensions = array<i32: 1>} : vector<1x16x16xi32>
    %21 = tpu.iota {dimensions = array<i32: 2>} : vector<1x16x16xi32>
    %22 = arith.cmpi eq, %20, %21 : vector<1x16x16xi32>
    %cst_6 = arith.constant 0.00999999977 : f32
    %23 = vector.broadcast %cst_6 : f32 to vector<1x16x16xf32>
    %24 = arith.addf %19, %23 : vector<1x16x16xf32>
    %25 = arith.select %22, %24, %19 : vector<1x16x16xi1>, vector<1x16x16xf32>
    %c0_7 = arith.constant 0 : index
    %c0_8 = arith.constant 0 : index
    %c0_9 = arith.constant 0 : index
    %26 = vector.load %arg3[%c0_7, %c0_8, %c0_9] : memref<1x16x16xf32, #tpu.memory_space<vmem>>, vector<1x16x16xf32>
    tpu.vector_store %arg3[%c0_7, %c0_8, %c0_9], %25 {strides = array<i32>} : memref<1x16x16xf32, #tpu.memory_space<vmem>>, vector<1x16x16xf32>,
    return
  }
  func.func @transform_0(%arg0: i32) -> (i32, i32, i32) {
    %c0_i32 = arith.constant 0 : i32
    %c0_i32_0 = arith.constant 0 : i32
    %c0_i32_1 = arith.constant 0 : i32
    return %arg0, %c0_i32, %c0_i32_0 : i32, i32, i32
  }
  func.func @transform_1(%arg0: i32) -> (i32, i32, i32) {
    %c0_i32 = arith.constant 0 : i32
    %c0_i32_0 = arith.constant 0 : i32
    %c0_i32_1 = arith.constant 0 : i32
    return %arg0, %c0_i32, %c0_i32_0 : i32, i32, i32
  }
  func.func @transform_2(%arg0: i32) -> (i32, i32, i32) {
    %c0_i32 = arith.constant 0 : i32
    %c0_i32_0 = arith.constant 0 : i32
    %c0_i32_1 = arith.constant 0 : i32
    return %arg0, %c0_i32, %c0_i32_0 : i32, i32, i32
  }
}

</mosaic_0001>

<bundles_post_ra>
// kernel: tpu_custom_call.1
= control target key start
LH: loop header
LB: loop body
LE: loop exit
PB: predicated region body
PF: predicated region fallthrough
CT: control target
= control target key end

     0   :  { %7 = vsyncpa [#allocation3], 0  ;;  %s560_s0 = inlined_call_operand.vmem [shape: f32[2,16,2], index: 0, kind: input, shape index: {}]   ;;  %s561_s1 = inlined_call_operand.vmem [shape: f32[2,2,16], index: 1, kind: input, shape index: {}]   ;;  %s562_s2 = inlined_call_operand.hbm [shape: f32[2,16,16], index: 2, kind: output, shape index: {}]  }
   0x1   :  { %9 = vsyncpa [#allocation3 + $0x1], 0  ;;  %s455_s9 = smov 0   ;;  %s457_s10 = smov 0  }
   0x2   :  { %s459_s11 = smov 0   ;;  %s461_s12 = smov 0  }
   0x3 LB: > { %s476_s13 = sadd.s32 4294967295, %s433_s12   ;;  %s308_s14 = sadd.s32 4294967294, %s433_s12   ;;  %s433_s12 = sphi %s461_s12, %s568_s12   ;;  %s429_s11 = sphi %s459_s11, %s567_s11   ;;  %s425_s10 = sphi %s457_s10, %s566_s10   ;;  %s421_s9 = sphi %s455_s9, %s565_s9  }
   0x4   : > { %s480_s15 = sadd.s32 1, %s433_s12   ;;  %s74_s16 = sadd.s32 1, %s429_s11 }
   0x5   : > { %s71_s17 = ssub.s32 %s433_s12, %s480_s15  ;;  %p84_p0 = scmp.ne.s32.totalorder %s429_s11, %s425_s10 }
   0x6   : > { %p72_p1 = scmp.eq.s32.totalorder %s71_s17, 0  ;;  %p85_p2 = scmp.eq.s32.totalorder %s476_s13, 1 }
   0x7   : > { %p90_p3 = scmp.ne.s32.totalorder %s425_s10, %s421_s9  ;;  %p91_p4 = scmp.eq.s32.totalorder %s308_s14, 1 }
   0x8   : > { %s491_s18 = scalar_select %p72_p1, %s429_s11, %s74_s16  }
   0x9   : > { %p493_p5 = por %p85_p2, %p84_p0  ;;  %p497_p6 = por %p91_p4, %p90_p3 }
   0xa   : > { %p311_p7 = scmp.ge.s32.totalorder %s433_s12, 1  ;;  %p124_p8 = scmp.lt.s32.totalorder %s433_s12, 3 }
   0xc   : > { %p125_p9 = pnand %p311_p7, %p124_p8 }
   0xd   : > { %p150_p10 = scmp.lt.s32.totalorder (!%p125_p9), %s476_s13, 1  ;;  %s147_s30 = sand.u32 (!%p125_p9), 1, %s425_s10  }
   0xe   : > { %128 = sbr.rel (%p125_p9) target bundleno = 195 (0xc3), region = 28  ;;  %s312_s3 = sshll.u32 (!%p125_p9), %s147_s30, 4 }
   0xf   : > { %s322_s4 = sshll.u32 (!%p125_p9), %s476_s13, 8  ;;  %s149_s5 = scalar_lea.vmem (!%p125_p9), [#allocation2], %s312_s3 }
  0x10   : > { %s234_s6 = sshll.u32 (!%p125_p9), %s149_s5, 4  ;;  %s516_s14 = scalar_lea.hbm (!%p125_p9), %s562_s2, %s322_s4  ;;  %s518_s6 = int_to_ptr.vmem [resolvable:$true] %s234_s6 }
  0x11   : > { %s373_s16 = scalar_lea.vmem (!%p125_p9), %s518_s6, 256  ;;  %s437_s17 = smov (!%p125_p9), [#allocation2]  }
  0x12   : > { %p374_p11 = scmp.ne.s32.totalorder (!%p125_p9), %s518_s6, %s373_s16 }
  0x13   : > { %v435_v0 = vmov 1   ;;  %v436_v1 = vmov 0   ;;  %s151_s21 = scalar_select %p150_p10, %s476_s13, 1  ;;  %v172_v4 = vlaneseq  ;;  %vm217_vm1 = vcmask 130048  }
  0x14   : > { %367 = vset.pattern.permute.xlu1 %v435_v0  ;;  %366 = vset.pattern.permute.xlu0 %v436_v1  ;;  %s520_s13 = scalar_lea.sflag [#allocation3], %s147_s30  ;;  %p375_p12 = pnand %p374_p11, %p493_p5 }
  0x15   : > { %s321_s22 = sshll.u32 %s151_s21, 4  ;;  %s315_s26 = sshll.u32 %s151_s21, 1  ;;  %v173_v5 = vshrl.u32 %v172_v4, 7  ;;  %v210_v29 = vand.u32 127, %v172_v4 }
  0x16   : > { %s154_s25 = scalar_lea.vmem %s560_s0, %s321_s22  ;;  %s158_s29 = scalar_lea.vmem %s561_s1, %s315_s26 }
  0x17   : > { %v159_v2 = vld [vmem:[%s154_s25] sm:$0xff]  ;;  %v160_v3 = vld [vmem:[%s154_s25 + $0x8] sm:$0xff]  ;;  %v190_v6 = vsub.s32 1, %v173_v5  ;;  %v174_v7 = vsub.s32 0, %v173_v5  ;;  %vm211_vm0 = vcmp.eq.s32.totalorder %v173_v5, %v210_v29  ;;  %v208_v32 = vadd.s32 8, %v173_v5  ;;  %p376_p13 = pneg %p375_p12  ;;  %s377_s21 = sshll.u32 %s437_s17, 4  ;;  %s378_s21 = int_to_ptr.vmem [resolvable:$false] %s377_s21 }
  0x18   : > { %181 = vperm.xlu1 %367, %v159_v2   ;;  %164 = vperm.xlu0 %366, %v159_v2   ;;  %v161_v8 = vld [vmem:[%s158_s29] sm:$0x3]  ;;  %s379_s22 = scalar_lea.vmem %s378_s21, 512  ;;  %p380_p0 = scmp.lt.s32.totalorder %s518_s6, %s378_s21 }
  0x19   : > { %v191_v9 = vrot.slane %v161_v8, %v190_v6  ;;  %v175_v10 = vrot.slane %v161_v8, %v174_v7  ;;  %vm212_vm2 = vcmp.eq.s32.totalorder %v208_v32, %v210_v29  ;;  %p381_p1 = scmp.lt.s32.totalorder %s379_s22, %s373_s16 }
  0x1b   : > { %p382_p2 = por %p381_p1, %p380_p0 }
  0x1c   : > { %185 = vperm.xlu1 %367, %v160_v3   ;;  %169 = vperm.xlu0 %366, %v160_v3  }
  0x1d   : > { %p383_p3 = pnand %p382_p2, %p376_p13 }
  0x20   : > { %368 = vset.pattern.permute.xlu0 %v435_v0 }
  0x93   : > { %v182_v11 = vpop.permute.xlu1 %181  ;;  %v165_v12 = vpop.permute.xlu0 %164 }
  0x94   : > { %v192_v13 = vsub.f32 %v182_v11, %v191_v9  ;;  %v176_v14 = vsub.f32 %v165_v12, %v175_v10 }
  0x96   : > { %v194_v15 = vmul.f32 %v192_v13, %v192_v13  ;;  %v178_v16 = vmul.f32 %v176_v14, %v176_v14 }
  0x97   : > { %v186_v17 = vpop.permute.xlu1 %185  ;;  %v170_v18 = vpop.permute.xlu0 %169 }
  0x98   : > { %v196_v19 = vadd.f32 %v194_v15, %v178_v16  ;;  %v193_v20 = vsub.f32 %v186_v17, %v191_v9  ;;  %v177_v21 = vsub.f32 %v170_v18, %v175_v10 }
  0x9a   : > { %v198_v22 = vmul.f32 -1.28, %v196_v19  ;;  %v195_v23 = vmul.f32 %v193_v20, %v193_v20  ;;  %v179_v24 = vmul.f32 %v177_v21, %v177_v21 }
  0x9c   : > { %v200_v25 = vmul.f32 1.442695, %v198_v22  ;;  %v197_v26 = vadd.f32 %v195_v23, %v179_v24 }
  0x9e   : > { %369 = vpow2.f32 %v200_v25  ;;  %v199_v27 = vmul.f32 -1.28, %v197_v26 }
  0xa0   : > { %v202_v28 = vmul.f32 1.442695, %v199_v27 }
  0xa2   : > { %371 = vpow2.f32 %v202_v28 }
  0xab   : > { %v370_v30 = vpop.eup %369 }
  0xac   : > { %v204_v31 = vmul.f32 0.6931472, %v370_v30 }
  0xae   : > { %v213_v33 = vadd.f32 0.01, %v204_v31 }
  0xaf   : > { %v372_v34 = vpop.eup %371 }
  0xb0   : > { %v215_v35 = vsel %vm211_vm0, %v213_v33, %v204_v31  ;;  %v205_v36 = vmul.f32 0.6931472, %v372_v34 }
  0xb1   : > { %218 = vst.msk [vmem:[%s149_s5] sm:$0xff] %vm217_vm1, %v215_v35 }
  0xb2   : > { %v214_v37 = vadd.f32 0.01, %v205_v36 }
  0xb4   : > { %v216_v38 = vsel %vm212_vm2, %v214_v37, %v205_v36 }
  0xb5   : > { %219 = vst.msk [vmem:[%s149_s5 + $0x8] sm:$0xff] %vm217_vm1, %v216_v38 }
  0xb6   : > { %386 = shalt.err (!%p383_p3)
}
  0xb7   : > { %s387_s23 = scalar_lea.hbm %s516_s14, 256  ;;  %s391_s26 = scalar_lea.hbm %s562_s2, 512 }
  0xb8   : > { %p388_p4 = scmp.ne.s32.totalorder %s516_s14, %s387_s23  ;;  %p392_p9 = scmp.lt.s32.totalorder %s516_s14, %s562_s2 }
  0xb9   : > { %p393_p10 = scmp.lt.s32.totalorder %s391_s26, %s387_s23 }
  0xba   : > { %p389_p7 = pnand %p388_p4, %p493_p5 }
  0xbb   : > { %p394_p11 = por %p393_p10, %p392_p9 }
  0xbc   : > { %p390_p8 = pneg %p389_p7 }
  0xbe   : > { %p395_p12 = pnand %p394_p11, %p390_p8 }
  0xc0   : > { %398 = shalt.err (!%p395_p12)
}
  0xc1   : > { %s438_s29 = smov 128   ;;  %s439_s30 = smov 8  }
  0xc2   : > { %323 = dma.vmem_to_hbm [thread:$0]  (%p493_p5), %s518_s6, 256, %s516_s14, %s520_s13, %s438_s29, %s438_s29, %s439_s30  }
  0xc3 PF: > { %p329_p13 = scmp.ge.s32.totalorder %s433_s12, 2  ;;  %s249_s3 = sand.u32 1, %s421_s9  }
  0xc4   : > { %s250_s4 = scalar_lea.sflag [#allocation3], %s249_s3 }
  0xc5   : > { %p326_p0 = pnand %p329_p13, %p497_p6 }
  0xc7   : > { %p327_p1 = pneg %p326_p0 }
  0xc9   : > { %416 = dma.done.wait (%p327_p1), %s250_s4, 256  }
  0xca   : > { %418 = vsyncadd (%p327_p1), %s250_s4, 4294967040  ;;  %p12_p2 = scmp.ge.s32.totalorder %s480_s15, 4   ;;  %s565_s9 = smov %s425_s10 }
  0xcb   : > { %s566_s10 = smov %s429_s11  ;;  %s567_s11 = smov %s491_s18 }
  0xcc   : > { %s568_s12 = smov %s480_s15  ;;  %14 = sbr.rel (!%p12_p2) target bundleno = 3 (0x3), region = 66 }
  0xd1   :  { %255 = vsyncpa [#allocation3], 1 }
  0xd2   :  { %257 = vsyncpa [#allocation3 + $0x1], 1 }

</bundles_post_ra>
